<compile_context>
chip_gen: v7x
topology: tpu7x:2x2x1
jax: 0.10.0
libtpu: 0.0.40
codegen_flags: <defaults>
</compile_context>

<pallas_src>
import functools

import jax
import jax.numpy as jnp
from jax.experimental import pallas as pl
from jax.experimental.pallas import tpu as pltpu

TEMPERATURE = 0.07
BASE_TEMPERATURE = 0.07
CONTRAST_MODE = "all"  # 'all' mode: anchor_feature == contrast_feature


def _supcon_kernel(fq_ref, fk_ref, labq_ref, labk_ref, out_ref,
                   m_i, l_i, sma, smk, *, n_valid, inv_temp, loss_scale):
    # fq_ref:   [tq, D]  anchor-row feature tile
    # fk_ref:   [tk, D]  contrast-row feature tile
    # labq_ref: [tq, 1]  anchor labels (int32)
    # labk_ref: [1, tk]  contrast labels (int32)
    # out_ref:  [tq, 1]  per-anchor loss (written at last contrast tile only)
    # scratch:  m_i/l_i/sma/smk [tq, 1] f32 running stats
    ki = pl.program_id(1)

    @pl.when(ki == 0)
    def _init():
        m_i[...] = jnp.full_like(m_i, -jnp.inf)
        l_i[...] = jnp.zeros_like(l_i)
        sma[...] = jnp.zeros_like(sma)
        smk[...] = jnp.zeros_like(smk)

    # Fold 1/temperature into the anchor tile: O(tq*D) VPU work, not O(tq*tk).
    fq = fq_ref[...] * inv_temp
    fk = fk_ref[...]
    # adc[tq, tk] = fq @ fk^T without materializing fk.T (contract last dims).
    adc = jax.lax.dot_general(
        fq, fk, (((1,), (1,)), ((), ())), preferred_element_type=jnp.float32)

    tq, tk = adc.shape
    qi = pl.program_id(0)
    row_ids = qi * tq + jax.lax.broadcasted_iota(jnp.int32, (tq, tk), 0)
    col_ids = ki * tk + jax.lax.broadcasted_iota(jnp.int32, (tq, tk), 1)
    valid_col = col_ids < n_valid                       # mask out padded columns
    # logits_mask: exclude self-contrast (global diagonal) and padding.
    lmask = jnp.where((row_ids != col_ids) & valid_col, 1.0, 0.0)
    # positive-pair mask, rebuilt in-kernel from labels.
    pmask = jnp.where(labq_ref[...] == labk_ref[...], 1.0, 0.0) * lmask

    # Online (flash-style) log-sum-exp of the denominator.
    m_new = jnp.maximum(m_i[...], jnp.max(adc, axis=1, keepdims=True))
    alpha = jnp.exp(m_i[...] - m_new)
    p = jnp.exp(adc - m_new) * lmask
    l_i[...] = alpha * l_i[...] + jnp.sum(p, axis=1, keepdims=True)
    m_i[...] = m_new
    # Exact (shift-independent) accumulators for the numerator.
    sma[...] = sma[...] + jnp.sum(pmask * adc, axis=1, keepdims=True)
    smk[...] = smk[...] + jnp.sum(pmask, axis=1, keepdims=True)

    @pl.when(ki == pl.num_programs(1) - 1)
    def _finalize():
        # sum(mask*log_prob) = sum(mask*adc) - sum(mask)*(row_max + log(sum exp))
        log_denom = m_i[...] + jnp.log(l_i[...])
        mean_log_prob_pos = (sma[...] - smk[...] * log_denom) / smk[...]
        out_ref[...] = (-loss_scale) * mean_log_prob_pos


def _choose_tiles(n):
    # Small N: one tile covering the (8-padded) problem -> grid (1, 1).
    if n <= 256:
        n_pad = max(8, ((n + 7) // 8) * 8)
        return n_pad, n_pad, n_pad
    # Large N: 256x256 tiles; N padded up to a tile multiple (padding is masked).
    tile = 256
    n_pad = ((n + tile - 1) // tile) * tile
    return n_pad, tile, tile


def _supcon_dense_jax(cf, mask_bb, n_views):
    # Plain-JAX path (used for the explicit user-supplied mask case and as the
    # reference in the tests) mirroring the PyTorch code exactly.
    n = cf.shape[0]
    adc = (cf @ cf.T) / TEMPERATURE
    logits = adc - jnp.max(adc, axis=1, keepdims=True)
    lmask = 1.0 - jnp.eye(n, dtype=jnp.float32)
    mask_nn = jnp.tile(mask_bb, (n_views, n_views)) * lmask
    exp_logits = jnp.exp(logits) * lmask
    log_prob = logits - jnp.log(jnp.sum(exp_logits, axis=1, keepdims=True))
    mlpp = jnp.sum(mask_nn * log_prob, axis=1) / jnp.sum(mask_nn, axis=1)
    return jnp.mean(-(TEMPERATURE / BASE_TEMPERATURE) * mlpp)


def supcon_loss(features, labels=None, mask=None):
    """features: [B, V, ...] float; labels: [B] int or None; mask: [B, B] or None."""
    if features.ndim < 3:
        raise ValueError("`features` needs to be [bsz, n_views, ...]")
    if features.ndim > 3:
        features = features.reshape(features.shape[0], features.shape[1], -1)
    if CONTRAST_MODE != "all":
        raise ValueError("Only 'all' contrast mode implemented here")
    B, V, D = features.shape
    N = V * B

    if labels is not None and mask is not None:
        raise ValueError("Cannot define both `labels` and `mask`")

    # contrast_feature = cat(unbind(features, dim=1), dim=0): view-major [V*B, D]
    contrast_feature = (
        jnp.transpose(features, (1, 0, 2)).reshape(N, D).astype(jnp.float32))

    if mask is not None:
        # TODO(synk): arbitrary user-supplied [B,B] masks are not expressible as an
        # in-kernel label compare; this (rare) path stays in plain JAX.
        return _supcon_dense_jax(contrast_feature, mask.astype(jnp.float32), V)

    if labels is None:
        # SimCLR: eye(B) positive mask == "same sample index" labels.
        labels_b = jnp.arange(B, dtype=jnp.int32)
    else:
        labels_b = jnp.asarray(labels).reshape(-1).astype(jnp.int32)
        if labels_b.shape[0] != B:
            raise ValueError("Num of labels does not match num of features")
    labels_n = jnp.tile(labels_b, V)                    # view-major labels, length N

    n_pad, tq, tk = _choose_tiles(N)
    feat_p = jnp.zeros((n_pad, D), jnp.float32).at[:N].set(contrast_feature)
    lab_p = jnp.zeros((n_pad,), jnp.int32).at[:N].set(labels_n)
    lab_col = lab_p.reshape(n_pad, 1)
    lab_row = lab_p.reshape(1, n_pad)

    kernel = functools.partial(
        _supcon_kernel,
        n_valid=N,
        inv_temp=float(1.0 / TEMPERATURE),
        loss_scale=float(TEMPERATURE / BASE_TEMPERATURE),
    )

    per_anchor = pl.pallas_call(
        kernel,
        out_shape=jax.ShapeDtypeStruct((n_pad, 1), jnp.float32),
        grid_spec=pltpu.PrefetchScalarGridSpec(
            num_scalar_prefetch=0,
            grid=(n_pad // tq, n_pad // tk),
            in_specs=[
                pl.BlockSpec((tq, D), lambda qi, ki: (qi, 0)),   # anchor rows
                pl.BlockSpec((tk, D), lambda qi, ki: (ki, 0)),   # contrast rows
                pl.BlockSpec((tq, 1), lambda qi, ki: (qi, 0)),   # anchor labels
                pl.BlockSpec((1, tk), lambda qi, ki: (0, ki)),   # contrast labels
            ],
            out_specs=pl.BlockSpec((tq, 1), lambda qi, ki: (qi, 0)),
            scratch_shapes=[pltpu.VMEM((tq, 1), jnp.float32)] * 4,
        ),
        compiler_params=pltpu.CompilerParams(
            dimension_semantics=("parallel", "arbitrary")),
    )(feat_p, feat_p, lab_col, lab_row)

    # loss.view(anchor_count, batch_size).mean() == mean over all N real anchors.
    return jnp.mean(per_anchor[:N, 0])


def _supcon_loss_ref(features, labels=None):
    B, V, D = features.shape
    if labels is None:
        labels = jnp.arange(B, dtype=jnp.int32)
    mask_bb = (labels.reshape(-1, 1) == labels.reshape(1, -1)).astype(jnp.float32)
    cf = jnp.transpose(features, (1, 0, 2)).reshape(V * B, D).astype(jnp.float32)
    return _supcon_dense_jax(cf, mask_bb, V)


if __name__ == "__main__":
    key = jax.random.PRNGKey(0)
    k1, k2, k3 = jax.random.split(key, 3)

    # Test 1: small single-tile case (N = V*B = 16, D = 128), supervised labels.
    B, V, D = 8, 2, 128
    feats = jax.random.normal(k1, (B, V, D), dtype=jnp.float32)
    feats = feats / jnp.linalg.norm(feats, axis=-1, keepdims=True)
    labels = jnp.array([0, 1, 0, 1, 2, 2, 3, 3], dtype=jnp.int32)

    loss = jax.block_until_ready(supcon_loss(feats, labels=labels))
    ref = _supcon_loss_ref(feats, labels)
    assert jnp.allclose(loss, ref, atol=1e-4, rtol=1e-4), (loss, ref)

    # Test 2: SimCLR mode (labels=None -> eye(B) positive mask).
    loss_u = jax.block_until_ready(supcon_loss(feats))
    ref_u = _supcon_loss_ref(feats, None)
    assert jnp.allclose(loss_u, ref_u, atol=1e-4, rtol=1e-4), (loss_u, ref_u)

    # Test 3: multi-tile / padded path (N = 288 -> padded to 512, grid (2, 2)).
    B2, V2, D2 = 144, 2, 128
    feats2 = jax.random.normal(k2, (B2, V2, D2), dtype=jnp.float32)
    feats2 = feats2 / jnp.linalg.norm(feats2, axis=-1, keepdims=True)
    labels2 = jax.random.randint(k3, (B2,), 0, 6, dtype=jnp.int32)

    loss2 = jax.block_until_ready(supcon_loss(feats2, labels=labels2))
    ref2 = _supcon_loss_ref(feats2, labels2)
    assert jnp.allclose(loss2, ref2, atol=1e-4, rtol=1e-4), (loss2, ref2)

    print("KERNEL_OK")
</pallas_src>

<mosaic_0001>
module attributes {stable_mosaic.version = 11 : i64} {
  func.func @_supcon_kernel(%arg0: i32, %arg1: i32, %arg2: memref<16x128xf32, #tpu.memory_space<vmem>>, %arg3: memref<16x128xf32, #tpu.memory_space<vmem>>, %arg4: memref<16x1xi32, #tpu.memory_space<vmem>>, %arg5: memref<1x16xi32, #tpu.memory_space<vmem>>, %arg6: memref<16x1xf32, #tpu.memory_space<vmem>>, %arg7: memref<16x1xf32, #tpu.memory_space<vmem>>, %arg8: memref<16x1xf32, #tpu.memory_space<vmem>>, %arg9: memref<16x1xf32, #tpu.memory_space<vmem>>, %arg10: memref<16x1xf32, #tpu.memory_space<vmem>>) attributes {dimension_semantics = [#tpu.dimension_semantics<parallel>, #tpu.dimension_semantics<arbitrary>], iteration_bounds = array<i64: 1, 1>, scalar_prefetch = 0 : i64, scratch_operands = 4 : i64, tpu.core_type = #tpu.core_type<tc>, window_params = [{transform_indices = @transform_0, window_bounds = array<i64: 16, 128>}, {transform_indices = @transform_1, window_bounds = array<i64: 16, 128>}, {transform_indices = @transform_2, window_bounds = array<i64: 16, 1>}, {transform_indices = @transform_3, window_bounds = array<i64: 1, 16>}, {transform_indices = @transform_4, window_bounds = array<i64: 16, 1>}]} {
    %c0_i32 = arith.constant 0 : i32
    %0 = arith.cmpi eq, %arg1, %c0_i32 : i32
    %1 = arith.extui %0 : i1 to i32
    %c0_i32_0 = arith.constant 0 : i32
    %2 = arith.cmpi ne, %1, %c0_i32_0 : i32
    scf.if %2 {
      %cst_39 = arith.constant 0xFF800000 : f32
      %64 = vector.broadcast %cst_39 : f32 to vector<16x1xf32>
      %c0_40 = arith.constant 0 : index
      %c0_41 = arith.constant 0 : index
      %65 = vector.load %arg7[%c0_40, %c0_41] : memref<16x1xf32, #tpu.memory_space<vmem>>, vector<16x1xf32>
      tpu.vector_store %arg7[%c0_40, %c0_41], %64 {strides = array<i32>} : memref<16x1xf32, #tpu.memory_space<vmem>>, vector<16x1xf32>,
      %cst_42 = arith.constant 0.000000e+00 : f32
      %66 = vector.broadcast %cst_42 : f32 to vector<16x1xf32>
      %c0_43 = arith.constant 0 : index
      %c0_44 = arith.constant 0 : index
      %67 = vector.load %arg8[%c0_43, %c0_44] : memref<16x1xf32, #tpu.memory_space<vmem>>, vector<16x1xf32>
      tpu.vector_store %arg8[%c0_43, %c0_44], %66 {strides = array<i32>} : memref<16x1xf32, #tpu.memory_space<vmem>>, vector<16x1xf32>,
      %cst_45 = arith.constant 0.000000e+00 : f32
      %68 = vector.broadcast %cst_45 : f32 to vector<16x1xf32>
      %c0_46 = arith.constant 0 : index
      %c0_47 = arith.constant 0 : index
      %69 = vector.load %arg9[%c0_46, %c0_47] : memref<16x1xf32, #tpu.memory_space<vmem>>, vector<16x1xf32>
      tpu.vector_store %arg9[%c0_46, %c0_47], %68 {strides = array<i32>} : memref<16x1xf32, #tpu.memory_space<vmem>>, vector<16x1xf32>,
      %cst_48 = arith.constant 0.000000e+00 : f32
      %70 = vector.broadcast %cst_48 : f32 to vector<16x1xf32>
      %c0_49 = arith.constant 0 : index
      %c0_50 = arith.constant 0 : index
      %71 = vector.load %arg10[%c0_49, %c0_50] : memref<16x1xf32, #tpu.memory_space<vmem>>, vector<16x1xf32>
      tpu.vector_store %arg10[%c0_49, %c0_50], %70 {strides = array<i32>} : memref<16x1xf32, #tpu.memory_space<vmem>>, vector<16x1xf32>,
    } else {
    }
    %c0 = arith.constant 0 : index
    %c0_1 = arith.constant 0 : index
    %3 = vector.load %arg2[%c0, %c0_1] : memref<16x128xf32, #tpu.memory_space<vmem>>, vector<16x128xf32>
    %cst = arith.constant 14.2857141 : f32
    %4 = vector.broadcast %cst : f32 to vector<16x128xf32>
    %5 = arith.mulf %3, %4 : vector<16x128xf32>
    %c0_2 = arith.constant 0 : index
    %c0_3 = arith.constant 0 : index
    %6 = vector.load %arg3[%c0_2, %c0_3] : memref<16x128xf32, #tpu.memory_space<vmem>>, vector<16x128xf32>
    %cst_4 = arith.constant dense<0.000000e+00> : vector<16x16xf32>
    %7 = tpu.matmul %5, %6, %cst_4 {dimension_numbers = #tpu.dot_dimension_numbers<[1], [1], [0], [0], [0, 0, 1, 0], [], []>} : vector<16x128xf32>, vector<16x128xf32>, vector<16x16xf32> -> vector<16x16xf32>
    %c16_i32 = arith.constant 16 : i32
    %8 = arith.muli %arg0, %c16_i32 : i32
    %9 = tpu.iota {dimensions = array<i32: 0>} : vector<16x16xi32>
    %10 = vector.broadcast %8 : i32 to vector<16x16xi32>
    %11 = arith.addi %10, %9 : vector<16x16xi32>
    %c16_i32_5 = arith.constant 16 : i32
    %12 = arith.muli %arg1, %c16_i32_5 : i32
    %13 = tpu.iota {dimensions = array<i32: 1>} : vector<16x16xi32>
    %14 = vector.broadcast %12 : i32 to vector<16x16xi32>
    %15 = arith.addi %14, %13 : vector<16x16xi32>
    %c16_i32_6 = arith.constant 16 : i32
    %16 = vector.broadcast %c16_i32_6 : i32 to vector<16x16xi32>
    %17 = arith.cmpi slt, %15, %16 : vector<16x16xi32>
    %18 = arith.cmpi ne, %11, %15 : vector<16x16xi32>
    %19 = arith.andi %18, %17 : vector<16x16xi1>
    %cst_7 = arith.constant 1.000000e+00 : f32
    %cst_8 = arith.constant 0.000000e+00 : f32
    %20 = vector.broadcast %cst_7 : f32 to vector<16x16xf32>
    %21 = vector.broadcast %cst_8 : f32 to vector<16x16xf32>
    %22 = arith.select %19, %20, %21 : vector<16x16xi1>, vector<16x16xf32>
    %c0_9 = arith.constant 0 : index
    %c0_10 = arith.constant 0 : index
    %23 = vector.load %arg4[%c0_9, %c0_10] : memref<16x1xi32, #tpu.memory_space<vmem>>, vector<16x1xi32>
    %c0_11 = arith.constant 0 : index
    %c0_12 = arith.constant 0 : index
    %24 = vector.load %arg5[%c0_11, %c0_12] : memref<1x16xi32, #tpu.memory_space<vmem>>, vector<1x16xi32>
    %25 = vector.broadcast %23 : vector<16x1xi32> to vector<16x16xi32>
    %26 = vector.broadcast %24 : vector<1x16xi32> to vector<16x16xi32>
    %27 = arith.cmpi eq, %25, %26 : vector<16x16xi32>
    %cst_13 = arith.constant 1.000000e+00 : f32
    %cst_14 = arith.constant 0.000000e+00 : f32
    %28 = vector.broadcast %cst_13 : f32 to vector<16x16xf32>
    %29 = vector.broadcast %cst_14 : f32 to vector<16x16xf32>
    %30 = arith.select %27, %28, %29 : vector<16x16xi1>, vector<16x16xf32>
    %31 = arith.mulf %30, %22 : vector<16x16xf32>
    %c0_15 = arith.constant 0 : index
    %c0_16 = arith.constant 0 : index
    %32 = vector.load %arg7[%c0_15, %c0_16] : memref<16x1xf32, #tpu.memory_space<vmem>>, vector<16x1xf32>
    %cst_17 = arith.constant dense<0xFF800000> : vector<16xf32>
    %33 = vector.multi_reduction <maximumf>, %7, %cst_17 [1] : vector<16x16xf32> to vector<16xf32>
    %34 = vector.shape_cast %33 : vector<16xf32> to vector<16x1xf32>
    %35 = arith.maximumf %32, %34 : vector<16x1xf32>
    %c0_18 = arith.constant 0 : index
    %c0_19 = arith.constant 0 : index
    %36 = vector.load %arg7[%c0_18, %c0_19] : memref<16x1xf32, #tpu.memory_space<vmem>>, vector<16x1xf32>
    %37 = arith.subf %36, %35 : vector<16x1xf32>
    %38 = math.exp %37 : vector<16x1xf32>
    %39 = vector.broadcast %35 : vector<16x1xf32> to vector<16x16xf32>
    %40 = arith.subf %7, %39 : vector<16x16xf32>
    %41 = math.exp %40 : vector<16x16xf32>
    %42 = arith.mulf %41, %22 : vector<16x16xf32>
    %c0_20 = arith.constant 0 : index
    %c0_21 = arith.constant 0 : index
    %43 = vector.load %arg8[%c0_20, %c0_21] : memref<16x1xf32, #tpu.memory_space<vmem>>, vector<16x1xf32>
    %44 = arith.mulf %38, %43 : vector<16x1xf32>
    %cst_22 = arith.constant dense<0.000000e+00> : vector<16xf32>
    %45 = vector.multi_reduction <add>, %42, %cst_22 [1] : vector<16x16xf32> to vector<16xf32>
    %46 = vector.shape_cast %45 : vector<16xf32> to vector<16x1xf32>
    %47 = arith.addf %44, %46 : vector<16x1xf32>
    %c0_23 = arith.constant 0 : index
    %c0_24 = arith.constant 0 : index
    %48 = vector.load %arg8[%c0_23, %c0_24] : memref<16x1xf32, #tpu.memory_space<vmem>>, vector<16x1xf32>
    tpu.vector_store %arg8[%c0_23, %c0_24], %47 {strides = array<i32>} : memref<16x1xf32, #tpu.memory_space<vmem>>, vector<16x1xf32>,
    %c0_25 = arith.constant 0 : index
    %c0_26 = arith.constant 0 : index
    %49 = vector.load %arg7[%c0_25, %c0_26] : memref<16x1xf32, #tpu.memory_space<vmem>>, vector<16x1xf32>
    tpu.vector_store %arg7[%c0_25, %c0_26], %35 {strides = array<i32>} : memref<16x1xf32, #tpu.memory_space<vmem>>, vector<16x1xf32>,
    %c0_27 = arith.constant 0 : index
    %c0_28 = arith.constant 0 : index
    %50 = vector.load %arg9[%c0_27, %c0_28] : memref<16x1xf32, #tpu.memory_space<vmem>>, vector<16x1xf32>
    %51 = arith.mulf %31, %7 : vector<16x16xf32>
    %cst_29 = arith.constant dense<0.000000e+00> : vector<16xf32>
    %52 = vector.multi_reduction <add>, %51, %cst_29 [1] : vector<16x16xf32> to vector<16xf32>
    %53 = vector.shape_cast %52 : vector<16xf32> to vector<16x1xf32>
    %54 = arith.addf %50, %53 : vector<16x1xf32>
    %c0_30 = arith.constant 0 : index
    %c0_31 = arith.constant 0 : index
    %55 = vector.load %arg9[%c0_30, %c0_31] : memref<16x1xf32, #tpu.memory_space<vmem>>, vector<16x1xf32>
    tpu.vector_store %arg9[%c0_30, %c0_31], %54 {strides = array<i32>} : memref<16x1xf32, #tpu.memory_space<vmem>>, vector<16x1xf32>,
    %c0_32 = arith.constant 0 : index
    %c0_33 = arith.constant 0 : index
    %56 = vector.load %arg10[%c0_32, %c0_33] : memref<16x1xf32, #tpu.memory_space<vmem>>, vector<16x1xf32>
    %cst_34 = arith.constant dense<0.000000e+00> : vector<16xf32>
    %57 = vector.multi_reduction <add>, %31, %cst_34 [1] : vector<16x16xf32> to vector<16xf32>
    %58 = vector.shape_cast %57 : vector<16xf32> to vector<16x1xf32>
    %59 = arith.addf %56, %58 : vector<16x1xf32>
    %c0_35 = arith.constant 0 : index
    %c0_36 = arith.constant 0 : index
    %60 = vector.load %arg10[%c0_35, %c0_36] : memref<16x1xf32, #tpu.memory_space<vmem>>, vector<16x1xf32>
    tpu.vector_store %arg10[%c0_35, %c0_36], %59 {strides = array<i32>} : memref<16x1xf32, #tpu.memory_space<vmem>>, vector<16x1xf32>,
    %c0_i32_37 = arith.constant 0 : i32
    %61 = arith.cmpi eq, %arg1, %c0_i32_37 : i32
    %62 = arith.extui %61 : i1 to i32
    %c0_i32_38 = arith.constant 0 : i32
    %63 = arith.cmpi ne, %62, %c0_i32_38 : i32
    scf.if %63 {
      %c0_39 = arith.constant 0 : index
      %c0_40 = arith.constant 0 : index
      %64 = vector.load %arg7[%c0_39, %c0_40] : memref<16x1xf32, #tpu.memory_space<vmem>>, vector<16x1xf32>
      %c0_41 = arith.constant 0 : index
      %c0_42 = arith.constant 0 : index
      %65 = vector.load %arg8[%c0_41, %c0_42] : memref<16x1xf32, #tpu.memory_space<vmem>>, vector<16x1xf32>
      %66 = math.log %65 : vector<16x1xf32>
      %67 = arith.addf %64, %66 : vector<16x1xf32>
      %c0_43 = arith.constant 0 : index
      %c0_44 = arith.constant 0 : index
      %68 = vector.load %arg9[%c0_43, %c0_44] : memref<16x1xf32, #tpu.memory_space<vmem>>, vector<16x1xf32>
      %c0_45 = arith.constant 0 : index
      %c0_46 = arith.constant 0 : index
      %69 = vector.load %arg10[%c0_45, %c0_46] : memref<16x1xf32, #tpu.memory_space<vmem>>, vector<16x1xf32>
      %70 = arith.mulf %69, %67 : vector<16x1xf32>
      %71 = arith.subf %68, %70 : vector<16x1xf32>
      %c0_47 = arith.constant 0 : index
      %c0_48 = arith.constant 0 : index
      %72 = vector.load %arg10[%c0_47, %c0_48] : memref<16x1xf32, #tpu.memory_space<vmem>>, vector<16x1xf32>
      %73 = arith.divf %71, %72 : vector<16x1xf32>
      %cst_49 = arith.constant -1.000000e+00 : f32
      %74 = vector.broadcast %cst_49 : f32 to vector<16x1xf32>
      %75 = arith.mulf %74, %73 : vector<16x1xf32>
      %c0_50 = arith.constant 0 : index
      %c0_51 = arith.constant 0 : index
      %76 = vector.load %arg6[%c0_50, %c0_51] : memref<16x1xf32, #tpu.memory_space<vmem>>, vector<16x1xf32>
      tpu.vector_store %arg6[%c0_50, %c0_51], %75 {strides = array<i32>} : memref<16x1xf32, #tpu.memory_space<vmem>>, vector<16x1xf32>,
    } else {
    }
    return
  }
  func.func @transform_0(%arg0: i32, %arg1: i32) -> (i32, i32) {
    %c0_i32 = arith.constant 0 : i32
    %c0_i32_0 = arith.constant 0 : i32
    return %arg0, %c0_i32 : i32, i32
  }
  func.func @transform_1(%arg0: i32, %arg1: i32) -> (i32, i32) {
    %c0_i32 = arith.constant 0 : i32
    %c0_i32_0 = arith.constant 0 : i32
    return %arg1, %c0_i32 : i32, i32
  }
  func.func @transform_2(%arg0: i32, %arg1: i32) -> (i32, i32) {
    %c0_i32 = arith.constant 0 : i32
    %c0_i32_0 = arith.constant 0 : i32
    return %arg0, %c0_i32 : i32, i32
  }
  func.func @transform_3(%arg0: i32, %arg1: i32) -> (i32, i32) {
    %c0_i32 = arith.constant 0 : i32
    %c0_i32_0 = arith.constant 0 : i32
    return %c0_i32, %arg1 : i32, i32
  }
  func.func @transform_4(%arg0: i32, %arg1: i32) -> (i32, i32) {
    %c0_i32 = arith.constant 0 : i32
    %c0_i32_0 = arith.constant 0 : i32
    return %arg0, %c0_i32 : i32, i32
  }
}

</mosaic_0001>

<bundles_post_ra>
// kernel: tpu_custom_call.1
= control target key start
LH: loop header
LB: loop body
LE: loop exit
PB: predicated region body
PF: predicated region fallthrough
CT: control target
= control target key end

     0   :  { %9 = vsyncpa [#allocation7], 0  ;;  %s339_s15 = smov [#allocation6]   ;;  %s440_s0 = inlined_call_operand.vmem [shape: f32[16,128], index: 0, kind: input, shape index: {}]   ;;  %s441_s1 = inlined_call_operand.hbm [shape: f32[16,128], index: 1, kind: input, shape index: {}]   ;;  %s442_s2 = inlined_call_operand.vmem [shape: s32[16,1], index: 2, kind: input, shape index: {}]   ;;  %s443_s3 = inlined_call_operand.vmem [shape: s32[1,16], index: 3, kind: input, shape index: {}]   ;;  %s444_s4 = inlined_call_operand.vmem [shape: f32[16,1], index: 4, kind: output, shape index: {}]  }
   0x1   :  { %s17_s16 = sshll.u32 %s339_s15, 4  ;;  %s315_s19 = scalar_lea.hbm %s441_s1, 256  ;;  %s18_s16 = int_to_ptr.vmem [resolvable:$true] %s17_s16 }
   0x2   :  { %p316_p0 = scmp.ne.s32.totalorder %s441_s1, %s315_s19  ;;  %p319_p1 = scmp.lt.u32.totalorder %s315_s19, %s441_s1 }
   0x4   :  { %p321_p2 = pnand %p319_p1, %p316_p0 }
   0x6   :  { %324 = shalt.err (!%p321_p2)
}
   0x7   :  { %s325_s24 = scalar_lea.vmem %s18_s16, 256  ;;  %p330_p4 = scmp.lt.s32.totalorder %s18_s16, %s18_s16 }
   0x8   :  { %p326_p3 = scmp.ne.s32.totalorder %s18_s16, %s325_s24  ;;  %p331_p5 = scmp.lt.s32.totalorder %s325_s24, %s325_s24 }
   0xa   :  { %p332_p6 = por %p331_p5, %p330_p4 }
   0xc   :  { %p333_p7 = pnand %p332_p6, %p326_p3 }
   0xe   :  { %336 = shalt.err (!%p333_p7)
}
   0xf   :  { %s340_s25 = smov 128   ;;  %s341_s26 = smov 8  }
  0x10   :  { %23 = dma.hbm_to_vmem [thread:$0]  %s441_s1, 256, %s18_s16, [#allocation7], %s340_s25, %s340_s25, %s341_s26  }
  0x11   :  { %337 = dma.done.wait [#allocation7], 256  }
  0x12   :  { %338 = vsyncadd [#allocation7], 4294967040  ;;  %v48_v0 = vld [vmem:[#allocation6] sm:$0xff]  ;;  %v49_v1 = vld [vmem:[#allocation6 + $0x8] sm:$0xff]  ;;  %v342_v7 = vmov 0   ;;  %vm35_vm0 = vcmask 7168   ;;  %v126_v16 = vlaneseq }
  0x13   :  { %v44_v2 = vld [vmem:[%s440_s0] sm:$0xff]  ;;  %v287_v3 = vpack.c.bf16 %v49_v1, %v48_v0  ;;  %v45_v5 = vld [vmem:[%s440_s0 + $0x8] sm:$0xff]  ;;  %298 = vset.pattern.permute.xlu0 %v342_v7  ;;  %297 = vset.pattern.permute.xlu1 %v342_v7  ;;  %v343_v8 = vmov -inf   ;;  %vm165_vm1 = vcmask 130048   ;;  %v344_v14 = vmov 0.0  }
  0x14   :  { %v46_v4 = vmul.f32 14.285714, %v44_v2  ;;  %v47_v6 = vmul.f32 14.285714, %v45_v5  ;;  %36 = vst.msk [vmem:[#allocation2] sm:$0xff] %vm35_vm0, %v343_v8  ;;  %37 = vst.msk [vmem:[#allocation2 + $0x8] sm:$0xff] %vm35_vm0, %v343_v8 }
  0x15   :  { %288 = vmatprep.subr.bf16.mxu0 %v287_v3  ;;  %v144_v13 = vld [vmem:[%s442_s2] sm:$0xff]  ;;  %38 = vst.msk [vmem:[#allocation3] sm:$0xff] %vm35_vm0, %v344_v14  ;;  %39 = vst.msk [vmem:[#allocation3 + $0x8] sm:$0xff] %vm35_vm0, %v344_v14  ;;  %v127_v20 = vshrl.u32 %v126_v16, 7  ;;  %v134_v21 = vand.u32 127, %v126_v16  ;;  %v145_v26 = vld [vmem:[%s442_s2 + $0x8] sm:$0xff] }
  0x16   :  { %284 = vmatprep.mubr.f32.mxu0 %v46_v4  ;;  %290 = vmatpush3.bf16.xpose.msra.mxu0 %v287_v3  ;;  %40 = vst.msk [vmem:[#allocation4] sm:$0xff] %vm35_vm0, %v344_v14  ;;  %41 = vst.msk [vmem:[#allocation4 + $0x8] sm:$0xff] %vm35_vm0, %v344_v14  ;;  %v275_v27 = vld [vmem:[%s443_s3] ss:$0 sm:$0xff] }
  0x17   :  { %42 = vst.msk [vmem:[#allocation5] sm:$0xff] %vm35_vm0, %v344_v14  ;;  %43 = vst.msk [vmem:[#allocation5 + $0x8] sm:$0xff] %vm35_vm0, %v344_v14  ;;  %vm137_vm2 = vcmp.lt.s32.totalorder %v134_v21, 16  ;;  %vm138_vm3 = vcmp.ne.s32.totalorder %v127_v20, %v134_v21  ;;  %v128_v40 = vadd.s32 8, %v127_v20 }
  0x18   :  { %vm140_vm4 = vmand %vm138_vm3, %vm137_vm2 }
  0x19   :  { %v142_v29 = vsel %vm140_vm4, 1.0, %v344_v14  ;;  %vm139_vm6 = vcmp.ne.s32.totalorder %v128_v40, %v134_v21 }
  0x1a   :  { %vm141_vm8 = vmand %vm139_vm6, %vm137_vm2 }
  0x1b   :  { %v404_v15 = vld [vmem:[#allocation2] sm:$0xff]  ;;  %v164_v19 = vld [vmem:[#allocation2 + $0x8] sm:$0xff]  ;;  %v143_v47 = vsel %vm141_vm8, 1.0, %v344_v14 }
  0x1c   :  { %v198_v61 = vld [vmem:[#allocation3] sm:$0xff]  ;;  %v199_v1 = vld [vmem:[#allocation3 + $0x8] sm:$0xff] }
  0x1d   :  { %285 = vmatmul.mubr.f32.vlgmr.msra.gmra.mrb[0].mxu0 %v47_v6 }
  0x1e   :  { %v229_v56 = vld [vmem:[#allocation5] sm:$0xff]  ;;  %v230_v6 = vld [vmem:[#allocation5 + $0x8] sm:$0xff] }
  0xf0   :  { %v390_v9 = vpop.f32.mrb[0].mxu0 }
  0xf1   :  { %v116_v10 = vpop.f32.mrb[1].mxu0  ;;  %v169_v12 = vsel %vm165_vm1, %v390_v9, -inf }
  0xf2   :  { %v166_v11 = vsel %vm165_vm1, %v116_v10, -inf }
  0xf3   :  { %167 = vmax.xlane.f32.xlu0 %v166_v11 }
  0xf7   :  { %170 = vmax.xlane.f32.xlu0 %v169_v12 }
 0x10d   :  { %148 = vperm.xlu0 %298, %v144_v13  }
 0x180   :  { %v168_v17 = vpop.xlane.xlu0 %167 }
 0x181   :  { %v172_v18 = vmax.f32 %v404_v15, %v168_v17 }
 0x183   :  { %v174_v22 = vsub.f32 %v404_v15, %v172_v18  ;;  %213 = vst.msk [vmem:[#allocation2] sm:$0xff] %vm35_vm0, %v172_v18  ;;  %182 = vperm.xlu1 %297, %v172_v18   ;;  %v216_v15 = vld [vmem:[#allocation4 + $0x8] sm:$0xff] }
 0x184   :  { %v171_v23 = vpop.xlane.xlu0 %170 }
 0x185   :  { %v173_v24 = vmax.f32 %v164_v19, %v171_v23  ;;  %v176_v58 = vmul.f32 1.442695, %v174_v22 }
 0x187   :  { %v175_v25 = vsub.f32 %v164_v19, %v173_v24  ;;  %214 = vst.msk [vmem:[#allocation2 + $0x8] sm:$0xff] %vm35_vm0, %v173_v24  ;;  %187 = vperm.xlu1 %297, %v173_v24  }
 0x189   :  { %v178_v59 = vmul.f32 1.442695, %v175_v25 }
 0x18a   :  { %v244_v21 = vld [vmem:[#allocation2] sm:$0xff] }
 0x18b   :  { %151 = vperm.xlu1 %297, %v145_v26  }
 0x18c   :  { %v149_v28 = vpop.permute.xlu0 %148 }
 0x18d   :  { %vm157_vm5 = vcmp.eq.s32.totalorder %v149_v28, %v275_v27 }
 0x18e   :  { %v159_v30 = vsel %vm157_vm5, 1.0, %v344_v14 }
 0x18f   :  { %v161_v31 = vmul.f32 %v159_v30, %v142_v29 }
 0x191   :  { %v217_v32 = vmul.f32 %v161_v31, %v116_v10  ;;  %v231_v33 = vsel %vm165_vm1, %v161_v31, 0.0 }
 0x192   :  { %232 = vadd.xlane.f32.xlu0 %v231_v33 }
 0x193   :  { %v219_v52 = vsel %vm165_vm1, %v217_v32, 0.0 }
 0x202   :  { %v183_v34 = vpop.permute.xlu1 %182 }
 0x203   :  { %v190_v35 = vsub.f32 %v116_v10, %v183_v34  ;;  %v215_v10 = vld [vmem:[#allocation4] sm:$0xff] }
 0x205   :  { %v192_v36 = vmul.f32 1.442695, %v190_v35 }
 0x206   :  { %v188_v37 = vpop.permute.xlu1 %187 }
 0x207   :  { %299 = vpow2.f32 %v192_v36  ;;  %v191_v38 = vsub.f32 %v390_v9, %v188_v37 }
 0x209   :  { %v194_v39 = vmul.f32 1.442695, %v191_v38 }
 0x20a   :  { %v152_v41 = vpop.permute.xlu1 %151 }
 0x20b   :  { %301 = vpow2.f32 %v194_v39  ;;  %vm158_vm7 = vcmp.eq.s32.totalorder %v152_v41, %v275_v27  ;;  %v245_v27 = vld [vmem:[#allocation2 + $0x8] sm:$0xff] }
 0x20c   :  { %v160_v46 = vsel %vm158_vm7, 1.0, %v344_v14  ;;  %303 = vpow2.f32 %v176_v58 }
 0x20d   :  { %v162_v50 = vmul.f32 %v160_v46, %v143_v47  ;;  %305 = vpow2.f32 %v178_v59 }
 0x20f   :  { %v234_v51 = vsel %vm165_vm1, %v162_v50, 0.0  ;;  %v218_v53 = vmul.f32 %v390_v9, %v162_v50 }
 0x211   :  { %v300_v42 = vpop.eup %299  ;;  %v222_v54 = vsel %vm165_vm1, %v218_v53, 0.0 }
 0x212   :  { %v196_v43 = vmul.f32 %v300_v42, %v142_v29 }
 0x214   :  { %v202_v44 = vsel %vm165_vm1, %v196_v43, 0.0 }
 0x215   :  { %v302_v45 = vpop.eup %301  ;;  %203 = vadd.xlane.f32.xlu1 %v202_v44 }
 0x216   :  { %v197_v48 = vmul.f32 %v302_v45, %v143_v47  ;;  %v304_v60 = vpop.eup %303 }
 0x217   :  { %v200_v62 = vmul.f32 %v304_v60, %v198_v61  ;;  %v306_v63 = vpop.eup %305 }
 0x218   :  { %v205_v49 = vsel %vm165_vm1, %v197_v48, 0.0  ;;  %v201_v3 = vmul.f32 %v306_v63, %v199_v1 }
 0x219   :  { %206 = vadd.xlane.f32.xlu1 %v205_v49 }
 0x21d   :  { %235 = vadd.xlane.f32.xlu1 %v234_v51 }
 0x21f   :  { %v233_v55 = vpop.xlane.xlu0 %232 }
 0x220   :  { %v237_v57 = vadd.f32 %v233_v55, %v229_v56 }
 0x221   :  { %220 = vadd.xlane.f32.xlu1 %v219_v52 }
 0x222   :  { %239 = vst.msk [vmem:[#allocation5] sm:$0xff] %vm35_vm0, %v237_v57 }
 0x225   :  { %223 = vadd.xlane.f32.xlu1 %v222_v54 }
 0x229   :  { %v256_v14 = vld [vmem:[#allocation5] sm:$0xff] }
 0x2a2   :  { %v204_v0 = vpop.xlane.xlu1 %203 }
 0x2a3   :  { %v208_v2 = vadd.f32 %v204_v0, %v200_v62 }
 0x2a5   :  { %211 = vst.msk [vmem:[#allocation3] sm:$0xff] %vm35_vm0, %v208_v2 }
 0x2a6   :  { %v207_v4 = vpop.xlane.xlu1 %206 }
 0x2a7   :  { %v209_v5 = vadd.f32 %v207_v4, %v201_v3 }
 0x2a9   :  { %212 = vst.msk [vmem:[#allocation3 + $0x8] sm:$0xff] %vm35_vm0, %v209_v5 }
 0x2aa   :  { %v236_v7 = vpop.xlane.xlu1 %235 }
 0x2ab   :  { %v238_v8 = vadd.f32 %v236_v7, %v230_v6 }
 0x2ac   :  { %v246_v9 = vld [vmem:[#allocation3] sm:$0xff] }
 0x2ad   :  { %307 = vlog2.f32 %v246_v9  ;;  %240 = vst.msk [vmem:[#allocation5 + $0x8] sm:$0xff] %vm35_vm0, %v238_v8 }
 0x2ae   :  { %v221_v11 = vpop.xlane.xlu1 %220 }
 0x2af   :  { %v225_v12 = vadd.f32 %v221_v11, %v215_v10 }
 0x2b0   :  { %v247_v13 = vld [vmem:[#allocation3 + $0x8] sm:$0xff] }
 0x2b1   :  { %309 = vlog2.f32 %v247_v13  ;;  %227 = vst.msk [vmem:[#allocation4] sm:$0xff] %vm35_vm0, %v225_v12 }
 0x2b2   :  { %v224_v16 = vpop.xlane.xlu1 %223  ;;  %311 = vrcp.f32 %v256_v14 }
 0x2b3   :  { %v226_v17 = vadd.f32 %v224_v16, %v216_v15 }
 0x2b4   :  { %v257_v18 = vld [vmem:[#allocation5 + $0x8] sm:$0xff] }
 0x2b5   :  { %228 = vst.msk [vmem:[#allocation4 + $0x8] sm:$0xff] %vm35_vm0, %v226_v17  ;;  %313 = vrcp.f32 %v257_v18 }
 0x2b7   :  { %v308_v19 = vpop.eup %307 }
 0x2b8   :  { %v249_v20 = vmul.f32 0.6931472, %v308_v19  ;;  %v254_v28 = vld [vmem:[#allocation4] sm:$0xff] }
 0x2ba   :  { %v252_v22 = vadd.f32 %v249_v20, %v244_v21 }
 0x2bb   :  { %v310_v23 = vpop.eup %309 }
 0x2bc   :  { %v258_v24 = vmul.f32 %v256_v14, %v252_v22  ;;  %v251_v25 = vmul.f32 0.6931472, %v310_v23  ;;  %v312_v26 = vpop.eup %311  ;;  %v255_v33 = vld [vmem:[#allocation4 + $0x8] sm:$0xff] }
 0x2be   :  { %v253_v29 = vadd.f32 %v251_v25, %v245_v27  ;;  %v260_v30 = vsub.f32 %v254_v28, %v258_v24 }
 0x2bf   :  { %v314_v36 = vpop.eup %313 }
 0x2c0   :  { %v259_v31 = vmul.f32 %v257_v18, %v253_v29  ;;  %v263_v32 = vmul.f32 %v312_v26, %v260_v30 }
 0x2c2   :  { %v266_v34 = vmul.f32 -1.0, %v263_v32  ;;  %v261_v35 = vsub.f32 %v255_v33, %v259_v31 }
 0x2c4   :  { %268 = vst.msk [vmem:[%s444_s4] sm:$0xff] %vm35_vm0, %v266_v34  ;;  %v265_v37 = vmul.f32 %v314_v36, %v261_v35 }
 0x2c6   :  { %v267_v38 = vmul.f32 -1.0, %v265_v37 }
 0x2c8   :  { %269 = vst.msk [vmem:[%s444_s4 + $0x8] sm:$0xff] %vm35_vm0, %v267_v38 }
 0x2c9   :  { %274 = vsyncpa [#allocation7], 1 }

</bundles_post_ra>
